<compile_context>
chip_gen: v7x
topology: tpu7x:2x2x1
jax: 0.10.0
libtpu: 0.0.40
codegen_flags: <defaults>
</compile_context>

<pallas_src>
import math

import jax
import jax.numpy as jnp
from jax.experimental import pallas as pl
from jax.experimental.pallas import tpu as pltpu


def _round_up(x, m):
    return ((x + m - 1) // m) * m


def _dnn_click_kernel(c_ref, u_ref, w1c_ref, w1u_ref, b1_ref, w2_ref, b2_ref, o_ref):
    """One batch tile of the fused MLP.

    c_ref   : (TB, X)   candidate_news_vector tile (native input dtype)
    u_ref   : (TB, X)   user_vector tile           (native input dtype)
    w1c_ref : (X, Hp)   first Linear weights acting on the candidate half (Hp lane-padded)
    w1u_ref : (X, Hp)   first Linear weights acting on the user half
    b1_ref  : (1, Hp)   f32 (zero-padded)
    w2_ref  : (1, Hp)   second Linear weights as a row (f32, zero-padded)
    b2_ref  : (1, 1)    f32 scalar in SMEM
    o_ref   : (1, TB)   lane-dense output row (f32)
    """
    c = c_ref[...]
    u = u_ref[...]

    # h = ReLU( cat(c, u) @ W1 + b1 )  ==  ReLU( c @ W1[:X] + u @ W1[X:] + b1 )
    h = jnp.dot(c, w1c_ref[...], preferred_element_type=jnp.float32)
    h = h + jnp.dot(u, w1u_ref[...], preferred_element_type=jnp.float32)
    h = jnp.maximum(h + b1_ref[...], 0.0)

    # Second layer: (1, Hp) contracted with (TB, Hp) over Hp -> (1, TB).
    # Produces the batch on the lane axis directly (dense stores), instead of a
    # lane-sparse (TB, 1) column / N=1 MXU matmul.
    y = jax.lax.dot_general(
        w2_ref[...], h,
        dimension_numbers=(((1,), (1,)), ((), ())),
        preferred_element_type=jnp.float32,
    )
    o_ref[...] = (y + b2_ref[0, 0]).astype(o_ref.dtype)


def prepare_params(params, x_dim, *, w_dtype=jnp.float32):
    """Split / lane-pad the Linear parameters once (hoisted out of the per-call path).

    params: {"w1": (2X, H), "b1": (H,), "w2": (H, 1), "b2": (1,)} with weights stored
    (in_features, out_features) so y = x @ W + b (== PyTorch x @ W.T).
    The hidden dim H is zero-padded to a multiple of 128 (free: the hidden activation
    occupies full 128-lane vregs regardless; zero columns + zero w2 entries contribute 0).
    """
    w1, b1, w2, b2 = params["w1"], params["b1"], params["w2"], params["b2"]
    assert w1.shape[0] == 2 * x_dim
    h = w1.shape[1]
    hp = _round_up(h, 128)
    pad = hp - h

    w1c = w1[:x_dim, :]
    w1u = w1[x_dim:, :]
    b1r = b1
    w2r = w2[:, 0]
    if pad:
        w1c = jnp.pad(w1c, ((0, 0), (0, pad)))
        w1u = jnp.pad(w1u, ((0, 0), (0, pad)))
        b1r = jnp.pad(b1r, (0, pad))
        w2r = jnp.pad(w2r, (0, pad))

    return {
        "w1c": w1c.astype(w_dtype),
        "w1u": w1u.astype(w_dtype),
        "b1": b1r.reshape(1, hp).astype(jnp.float32),
        "w2_row": w2r.reshape(1, hp).astype(jnp.float32),
        "b2": b2.reshape(1, 1).astype(jnp.float32),
    }


def dnn_click_predictor(candidate_news_vector, user_vector, params, *,
                        vmem_budget_bytes=32 * 1024 * 1024,
                        single_buffer_weights=True):
    """Fused DNNClickPredictor forward. Returns shape (batch,).

    Inputs are streamed in their native dtype (no wrapper-side cast/pad passes).
    If the producer already emits bf16 inputs, DMA traffic halves automatically.
    """
    B, X = candidate_news_vector.shape
    assert user_vector.shape == (B, X)

    kp = params if "w1c" in params else prepare_params(
        params, X, w_dtype=candidate_news_vector.dtype)
    Hp = kp["w1c"].shape[1]

    in_bytes = jnp.dtype(candidate_news_vector.dtype).itemsize
    w_bytes = jnp.dtype(kp["w1c"].dtype).itemsize

    # ---- batch-tile selection from a VMEM budget (no wrapper-side padding) ----
    # Per-row VMEM cost: 2 inputs x 2 pipeline buffers x X, plus ~3 live f32
    # copies of the (lane-padded) hidden activation.
    per_row = 2 * 2 * X * in_bytes + 3 * Hp * 4
    tb_budget = max(128, (vmem_budget_bytes // per_row) // 128 * 128)
    if B <= 256:
        tb = B  # single block == full array dims (legal for any B, incl. non-aligned)
    else:
        # >= 2 tiles (v7x megacore + DMA/compute overlap), lane-aligned block width.
        tb = min(tb_budget, _round_up(pl.cdiv(B, 2), 128))
    num_tiles = pl.cdiv(B, tb)

    # vmem limit from the actual footprint (+ headroom), capped v7x-safe.
    weights_bytes = 2 * (2 * X * Hp * w_bytes + 2 * Hp * 4)
    vmem_limit = per_row * tb + weights_bytes + 2 * tb * 4 + (8 << 20)
    vmem_limit = int(min(max(vmem_limit, 16 << 20), 64 << 20))

    def build(buffer_invariant_once):
        inv_kwargs = (dict(pipeline_mode=pl.Buffered(buffer_count=1))
                      if buffer_invariant_once else {})
        return pl.pallas_call(
            _dnn_click_kernel,
            out_shape=jax.ShapeDtypeStruct((1, B), jnp.float32),
            grid=(num_tiles,),
            in_specs=[
                pl.BlockSpec((tb, X), lambda i: (i, 0)),                 # candidate tile
                pl.BlockSpec((tb, X), lambda i: (i, 0)),                 # user tile
                pl.BlockSpec((X, Hp), lambda i: (0, 0), **inv_kwargs),   # W1 (candidate half)
                pl.BlockSpec((X, Hp), lambda i: (0, 0), **inv_kwargs),   # W1 (user half)
                pl.BlockSpec((1, Hp), lambda i: (0, 0), **inv_kwargs),   # b1
                pl.BlockSpec((1, Hp), lambda i: (0, 0), **inv_kwargs),   # w2 as a row
                pl.BlockSpec(memory_space=pltpu.MemorySpace.SMEM),       # b2 scalar
            ],
            out_specs=pl.BlockSpec((1, tb), lambda i: (0, i)),
            compiler_params=pltpu.CompilerParams(
                dimension_semantics=("parallel",),
                vmem_limit_bytes=vmem_limit,
            ),
        )

    args = (candidate_news_vector, user_vector,
            kp["w1c"], kp["w1u"], kp["b1"], kp["w2_row"], kp["b2"])

    if single_buffer_weights:
        try:
            out = build(True)(*args)
        except Exception:
            # Fallback if this jax build rejects pipeline_mode=Buffered(1); costs
            # only one extra VMEM copy of the (small) weight blocks.
            out = build(False)(*args)
    else:
        out = build(False)(*args)

    # torch .squeeze() on (B, 1) -> documented contract is shape (batch,).
    # (For B == 1 torch would squeeze to a 0-d scalar; we keep (1,).)
    return out[0]


def init_params(key, input_size, hidden_size=None, dtype=jnp.float32):
    """Deterministic synthetic init matching the module's parameter shapes."""
    if hidden_size is None:
        hidden_size = int(math.sqrt(input_size))
    k1, k2, k3, k4 = jax.random.split(key, 4)
    bound1 = 1.0 / math.sqrt(input_size)
    bound2 = 1.0 / math.sqrt(hidden_size)
    w1 = jax.random.uniform(k1, (input_size, hidden_size), dtype, -bound1, bound1)
    b1 = jax.random.uniform(k2, (hidden_size,), dtype, -bound1, bound1)
    w2 = jax.random.uniform(k3, (hidden_size, 1), dtype, -bound2, bound2)
    b2 = jax.random.uniform(k4, (1,), dtype, -bound2, bound2)
    return {"w1": w1, "b1": b1, "w2": w2, "b2": b2}


def reference_forward(candidate, user, params):
    x = jnp.concatenate([candidate, user], axis=-1)
    h = jnp.maximum(x @ params["w1"] + params["b1"], 0.0)
    return (h @ params["w2"] + params["b2"])[:, 0]


if __name__ == "__main__":
    key = jax.random.PRNGKey(0)
    kc, ku, kp, kc2, ku2 = jax.random.split(key, 5)

    # Small shapes consistent with the module: candidate/user (B, X), concat -> 2X.
    B, X = 8, 32
    input_size = 2 * X                          # size after concat = 64
    hidden_size = int(math.sqrt(input_size))    # = 8, module default

    candidate = jax.random.normal(kc, (B, X), dtype=jnp.float32)
    user = jax.random.normal(ku, (B, X), dtype=jnp.float32)
    params = init_params(kp, input_size, hidden_size)

    ref = reference_forward(candidate, user, params)
    out = jax.block_until_ready(dnn_click_predictor(candidate, user, params))
    assert out.shape == (B,)
    assert jnp.allclose(out, ref, atol=1e-5, rtol=1e-5)

    # Exercise the multi-tile path with a ragged last block (no wrapper padding).
    B2 = 300
    candidate2 = jax.random.normal(kc2, (B2, X), dtype=jnp.float32)
    user2 = jax.random.normal(ku2, (B2, X), dtype=jnp.float32)
    ref2 = reference_forward(candidate2, user2, params)
    out2 = jax.block_until_ready(dnn_click_predictor(candidate2, user2, params))
    assert out2.shape == (B2,)
    assert jnp.allclose(out2, ref2, atol=1e-5, rtol=1e-5)

    print("KERNEL_OK")
</pallas_src>

<mosaic_0001>
module attributes {stable_mosaic.version = 11 : i64} {
  func.func @_dnn_click_kernel(%arg0: i32, %arg1: memref<8x32xf32, #tpu.memory_space<vmem>>, %arg2: memref<8x32xf32, #tpu.memory_space<vmem>>, %arg3: memref<32x128xf32, #tpu.memory_space<vmem>>, %arg4: memref<32x128xf32, #tpu.memory_space<vmem>>, %arg5: memref<1x128xf32, #tpu.memory_space<vmem>>, %arg6: memref<1x128xf32, #tpu.memory_space<vmem>>, %arg7: memref<1x1xf32, #tpu.memory_space<smem>>, %arg8: memref<1x8xf32, #tpu.memory_space<vmem>>) attributes {dimension_semantics = [#tpu.dimension_semantics<parallel>], iteration_bounds = array<i64: 1>, scalar_prefetch = 0 : i64, scratch_operands = 0 : i64, tpu.core_type = #tpu.core_type<tc>, window_params = [{transform_indices = @transform_0, window_bounds = array<i64: 8, 32>}, {transform_indices = @transform_1, window_bounds = array<i64: 8, 32>}, {pipeline_mode = #tpu.pipeline_mode<synchronous>, transform_indices = @transform_2, window_bounds = array<i64: 32, 128>}, {pipeline_mode = #tpu.pipeline_mode<synchronous>, transform_indices = @transform_3, window_bounds = array<i64: 32, 128>}, {pipeline_mode = #tpu.pipeline_mode<synchronous>, transform_indices = @transform_4, window_bounds = array<i64: 1, 128>}, {pipeline_mode = #tpu.pipeline_mode<synchronous>, transform_indices = @transform_5, window_bounds = array<i64: 1, 128>}, {transform_indices = @transform_6, window_bounds = array<i64: 1, 1>}, {transform_indices = @transform_7, window_bounds = array<i64: 1, 8>}]} {
    %c0 = arith.constant 0 : index
    %c0_0 = arith.constant 0 : index
    %0 = vector.load %arg1[%c0, %c0_0] : memref<8x32xf32, #tpu.memory_space<vmem>>, vector<8x32xf32>
    %c0_1 = arith.constant 0 : index
    %c0_2 = arith.constant 0 : index
    %1 = vector.load %arg2[%c0_1, %c0_2] : memref<8x32xf32, #tpu.memory_space<vmem>>, vector<8x32xf32>
    %c0_3 = arith.constant 0 : index
    %c0_4 = arith.constant 0 : index
    %2 = vector.load %arg3[%c0_3, %c0_4] : memref<32x128xf32, #tpu.memory_space<vmem>>, vector<32x128xf32>
    %cst = arith.constant dense<0.000000e+00> : vector<8x128xf32>
    %3 = tpu.matmul %0, %2, %cst {dimension_numbers = #tpu.dot_dimension_numbers<[1], [0], [0], [1], [0, 0, 1, 1], [], []>} : vector<8x32xf32>, vector<32x128xf32>, vector<8x128xf32> -> vector<8x128xf32>
    %c0_5 = arith.constant 0 : index
    %c0_6 = arith.constant 0 : index
    %4 = vector.load %arg4[%c0_5, %c0_6] : memref<32x128xf32, #tpu.memory_space<vmem>>, vector<32x128xf32>
    %cst_7 = arith.constant dense<0.000000e+00> : vector<8x128xf32>
    %5 = tpu.matmul %1, %4, %cst_7 {dimension_numbers = #tpu.dot_dimension_numbers<[1], [0], [0], [1], [0, 0, 1, 1], [], []>} : vector<8x32xf32>, vector<32x128xf32>, vector<8x128xf32> -> vector<8x128xf32>
    %6 = arith.addf %3, %5 : vector<8x128xf32>
    %c0_8 = arith.constant 0 : index
    %c0_9 = arith.constant 0 : index
    %7 = vector.load %arg5[%c0_8, %c0_9] : memref<1x128xf32, #tpu.memory_space<vmem>>, vector<1x128xf32>
    %8 = vector.broadcast %7 : vector<1x128xf32> to vector<8x128xf32>
    %9 = arith.addf %6, %8 : vector<8x128xf32>
    %cst_10 = arith.constant 0.000000e+00 : f32
    %10 = vector.broadcast %cst_10 : f32 to vector<8x128xf32>
    %11 = arith.maximumf %9, %10 : vector<8x128xf32>
    %c0_11 = arith.constant 0 : index
    %c0_12 = arith.constant 0 : index
    %12 = vector.load %arg6[%c0_11, %c0_12] : memref<1x128xf32, #tpu.memory_space<vmem>>, vector<1x128xf32>
    %cst_13 = arith.constant dense<0.000000e+00> : vector<1x8xf32>
    %13 = tpu.matmul %12, %11, %cst_13 {dimension_numbers = #tpu.dot_dimension_numbers<[1], [1], [0], [0], [0, 0, 1, 0], [], []>} : vector<1x128xf32>, vector<8x128xf32>, vector<1x8xf32> -> vector<1x8xf32>
    %c0_14 = arith.constant 0 : index
    %c0_15 = arith.constant 0 : index
    %14 = memref.load %arg7[%c0_14, %c0_15] : memref<1x1xf32, #tpu.memory_space<smem>>
    %15 = vector.broadcast %14 : f32 to vector<1x8xf32>
    %16 = arith.addf %13, %15 : vector<1x8xf32>
    %c0_16 = arith.constant 0 : index
    %c0_17 = arith.constant 0 : index
    %17 = vector.load %arg8[%c0_16, %c0_17] : memref<1x8xf32, #tpu.memory_space<vmem>>, vector<1x8xf32>
    tpu.vector_store %arg8[%c0_16, %c0_17], %16 {strides = array<i32>} : memref<1x8xf32, #tpu.memory_space<vmem>>, vector<1x8xf32>,
    return
  }
  func.func @transform_0(%arg0: i32) -> (i32, i32) {
    %c0_i32 = arith.constant 0 : i32
    %c0_i32_0 = arith.constant 0 : i32
    return %arg0, %c0_i32 : i32, i32
  }
  func.func @transform_1(%arg0: i32) -> (i32, i32) {
    %c0_i32 = arith.constant 0 : i32
    %c0_i32_0 = arith.constant 0 : i32
    return %arg0, %c0_i32 : i32, i32
  }
  func.func @transform_2(%arg0: i32) -> (i32, i32) {
    %c0_i32 = arith.constant 0 : i32
    %c0_i32_0 = arith.constant 0 : i32
    %c0_i32_1 = arith.constant 0 : i32
    return %c0_i32, %c0_i32_0 : i32, i32
  }
  func.func @transform_3(%arg0: i32) -> (i32, i32) {
    %c0_i32 = arith.constant 0 : i32
    %c0_i32_0 = arith.constant 0 : i32
    %c0_i32_1 = arith.constant 0 : i32
    return %c0_i32, %c0_i32_0 : i32, i32
  }
  func.func @transform_4(%arg0: i32) -> (i32, i32) {
    %c0_i32 = arith.constant 0 : i32
    %c0_i32_0 = arith.constant 0 : i32
    %c0_i32_1 = arith.constant 0 : i32
    return %c0_i32, %c0_i32_0 : i32, i32
  }
  func.func @transform_5(%arg0: i32) -> (i32, i32) {
    %c0_i32 = arith.constant 0 : i32
    %c0_i32_0 = arith.constant 0 : i32
    %c0_i32_1 = arith.constant 0 : i32
    return %c0_i32, %c0_i32_0 : i32, i32
  }
  func.func @transform_6(%arg0: i32) -> (i32, i32) {
    %c0_i32 = arith.constant 0 : i32
    %c0_i32_0 = arith.constant 0 : i32
    %c0_i32_1 = arith.constant 0 : i32
    return %c0_i32, %c0_i32_0 : i32, i32
  }
  func.func @transform_7(%arg0: i32) -> (i32, i32) {
    %c0_i32 = arith.constant 0 : i32
    %c0_i32_0 = arith.constant 0 : i32
    return %c0_i32, %arg0 : i32, i32
  }
}

module attributes {stable_mosaic.version = 11 : i64} {
  func.func @_dnn_click_kernel(%arg0: i32, %arg1: memref<8x32xf32, #tpu.memory_space<vmem>>, %arg2: memref<8x32xf32, #tpu.memory_space<vmem>>, %arg3: memref<32x128xf32, #tpu.memory_space<vmem>>, %arg4: memref<32x128xf32, #tpu.memory_space<vmem>>, %arg5: memref<1x128xf32, #tpu.memory_space<vmem>>, %arg6: memref<1x128xf32, #tpu.memory_space<vmem>>, %arg7: memref<1x1xf32, #tpu.memory_space<smem>>, %arg8: memref<1x8xf32, #tpu.memory_space<vmem>>) attributes {dimension_semantics = [#tpu.dimension_semantics<parallel>], iteration_bounds = array<i64: 1>, scalar_prefetch = 0 : i64, scratch_operands = 0 : i64, tpu.core_type = #tpu.core_type<tc>, window_params = [{transform_indices = @transform_0, window_bounds = array<i64: 8, 32>}, {transform_indices = @transform_1, window_bounds = array<i64: 8, 32>}, {pipeline_mode = #tpu.pipeline_mode<synchronous>, transform_indices = @transform_2, window_bounds = array<i64: 32, 128>}, {pipeline_mode = #tpu.pipeline_mode<synchronous>, transform_indices = @transform_3, window_bounds = array<i64: 32, 128>}, {pipeline_mode = #tpu.pipeline_mode<synchronous>, transform_indices = @transform_4, window_bounds = array<i64: 1, 128>}, {pipeline_mode = #tpu.pipeline_mode<synchronous>, transform_indices = @transform_5, window_bounds = array<i64: 1, 128>}, {transform_indices = @transform_6, window_bounds = array<i64: 1, 1>}, {transform_indices = @transform_7, window_bounds = array<i64: 1, 8>}]} {
    %c0 = arith.constant 0 : index
    %c0_0 = arith.constant 0 : index
    %0 = vector.load %arg1[%c0, %c0_0] : memref<8x32xf32, #tpu.memory_space<vmem>>, vector<8x32xf32>
    %c0_1 = arith.constant 0 : index
    %c0_2 = arith.constant 0 : index
    %1 = vector.load %arg2[%c0_1, %c0_2] : memref<8x32xf32, #tpu.memory_space<vmem>>, vector<8x32xf32>
    %c0_3 = arith.constant 0 : index
    %c0_4 = arith.constant 0 : index
    %2 = vector.load %arg3[%c0_3, %c0_4] : memref<32x128xf32, #tpu.memory_space<vmem>>, vector<32x128xf32>
    %cst = arith.constant dense<0.000000e+00> : vector<8x128xf32>
    %3 = tpu.matmul %0, %2, %cst {dimension_numbers = #tpu.dot_dimension_numbers<[1], [0], [0], [1], [0, 0, 1, 1], [], []>} : vector<8x32xf32>, vector<32x128xf32>, vector<8x128xf32> -> vector<8x128xf32>
    %c0_5 = arith.constant 0 : index
    %c0_6 = arith.constant 0 : index
    %4 = vector.load %arg4[%c0_5, %c0_6] : memref<32x128xf32, #tpu.memory_space<vmem>>, vector<32x128xf32>
    %cst_7 = arith.constant dense<0.000000e+00> : vector<8x128xf32>
    %5 = tpu.matmul %1, %4, %cst_7 {dimension_numbers = #tpu.dot_dimension_numbers<[1], [0], [0], [1], [0, 0, 1, 1], [], []>} : vector<8x32xf32>, vector<32x128xf32>, vector<8x128xf32> -> vector<8x128xf32>
    %6 = arith.addf %3, %5 : vector<8x128xf32>
    %c0_8 = arith.constant 0 : index
    %c0_9 = arith.constant 0 : index
    %7 = vector.load %arg5[%c0_8, %c0_9] : memref<1x128xf32, #tpu.memory_space<vmem>>, vector<1x128xf32>
    %8 = vector.broadcast %7 : vector<1x128xf32> to vector<8x128xf32>
    %9 = arith.addf %6, %8 : vector<8x128xf32>
    %cst_10 = arith.constant 0.000000e+00 : f32
    %10 = vector.broadcast %cst_10 : f32 to vector<8x128xf32>
    %11 = arith.maximumf %9, %10 : vector<8x128xf32>
    %c0_11 = arith.constant 0 : index
    %c0_12 = arith.constant 0 : index
    %12 = vector.load %arg6[%c0_11, %c0_12] : memref<1x128xf32, #tpu.memory_space<vmem>>, vector<1x128xf32>
    %cst_13 = arith.constant dense<0.000000e+00> : vector<1x8xf32>
    %13 = tpu.matmul %12, %11, %cst_13 {dimension_numbers = #tpu.dot_dimension_numbers<[1], [1], [0], [0], [0, 0, 1, 0], [], []>} : vector<1x128xf32>, vector<8x128xf32>, vector<1x8xf32> -> vector<1x8xf32>
    %c0_14 = arith.constant 0 : index
    %c0_15 = arith.constant 0 : index
    %14 = memref.load %arg7[%c0_14, %c0_15] : memref<1x1xf32, #tpu.memory_space<smem>>
    %15 = vector.broadcast %14 : f32 to vector<1x8xf32>
    %16 = arith.addf %13, %15 : vector<1x8xf32>
    %c0_16 = arith.constant 0 : index
    %c0_17 = arith.constant 0 : index
    %17 = vector.load %arg8[%c0_16, %c0_17] : memref<1x8xf32, #tpu.memory_space<vmem>>, vector<1x8xf32>
    tpu.vector_store %arg8[%c0_16, %c0_17], %16 {strides = array<i32>} : memref<1x8xf32, #tpu.memory_space<vmem>>, vector<1x8xf32>,
    return
  }
  func.func @transform_0(%arg0: i32) -> (i32, i32) {
    %c0_i32 = arith.constant 0 : i32
    %c0_i32_0 = arith.constant 0 : i32
    return %arg0, %c0_i32 : i32, i32
  }
  func.func @transform_1(%arg0: i32) -> (i32, i32) {
    %c0_i32 = arith.constant 0 : i32
    %c0_i32_0 = arith.constant 0 : i32
    return %arg0, %c0_i32 : i32, i32
  }
  func.func @transform_2(%arg0: i32) -> (i32, i32) {
    %c0_i32 = arith.constant 0 : i32
    %c0_i32_0 = arith.constant 0 : i32
    %c0_i32_1 = arith.constant 0 : i32
    return %c0_i32, %c0_i32_0 : i32, i32
  }
  func.func @transform_3(%arg0: i32) -> (i32, i32) {
    %c0_i32 = arith.constant 0 : i32
    %c0_i32_0 = arith.constant 0 : i32
    %c0_i32_1 = arith.constant 0 : i32
    return %c0_i32, %c0_i32_0 : i32, i32
  }
  func.func @transform_4(%arg0: i32) -> (i32, i32) {
    %c0_i32 = arith.constant 0 : i32
    %c0_i32_0 = arith.constant 0 : i32
    %c0_i32_1 = arith.constant 0 : i32
    return %c0_i32, %c0_i32_0 : i32, i32
  }
  func.func @transform_5(%arg0: i32) -> (i32, i32) {
    %c0_i32 = arith.constant 0 : i32
    %c0_i32_0 = arith.constant 0 : i32
    %c0_i32_1 = arith.constant 0 : i32
    return %c0_i32, %c0_i32_0 : i32, i32
  }
  func.func @transform_6(%arg0: i32) -> (i32, i32) {
    %c0_i32 = arith.constant 0 : i32
    %c0_i32_0 = arith.constant 0 : i32
    %c0_i32_1 = arith.constant 0 : i32
    return %c0_i32, %c0_i32_0 : i32, i32
  }
  func.func @transform_7(%arg0: i32) -> (i32, i32) {
    %c0_i32 = arith.constant 0 : i32
    %c0_i32_0 = arith.constant 0 : i32
    return %c0_i32, %arg0 : i32, i32
  }
}

</mosaic_0001>

<bundles_post_ra>
// kernel: tpu_custom_call.1
= control target key start
LH: loop header
LB: loop body
LE: loop exit
PB: predicated region body
PF: predicated region fallthrough
CT: control target
= control target key end

     0   :  { %13 = vsyncpa [#allocation4], 0  ;;  %s641_s0 = inlined_call_operand.hbm [shape: f32[8,32], index: 0, kind: input, shape index: {}]   ;;  %s642_s1 = inlined_call_operand.hbm [shape: f32[8,32], index: 1, kind: input, shape index: {}]   ;;  %s643_s2 = inlined_call_operand.hbm [shape: f32[32,128], index: 2, kind: input, shape index: {}]   ;;  %s644_s3 = inlined_call_operand.hbm [shape: f32[32,128], index: 3, kind: input, shape index: {}]   ;;  %s645_s4 = inlined_call_operand.vmem [shape: f32[1,128], index: 4, kind: input, shape index: {}]   ;;  %s646_s5 = inlined_call_operand.vmem [shape: f32[1,128], index: 5, kind: input, shape index: {}]   ;;  %s647_s6 = inlined_call_operand.<no memory space> [shape: f32[1,1], index: 6, kind: input, shape index: {}]   ;;  %s648_s7 = inlined_call_operand.hbm [shape: f32[1,8], index: 7, kind: output, shape index: {}]  }
   0x1   :  { %14 = vsyncpa [#allocation7], 0 }
   0x2   :  { %15 = vsyncpa [#allocation10], 0 }
   0x3   :  { %16 = vsyncpa [#allocation5], 0  ;;  %s519_s24 = smov [#allocation6]   ;;  %s520_s26 = smov [#allocation3]  }
   0x4   :  { %s33_s25 = sshll.u32 %s519_s24, 4  ;;  %s23_s27 = sshll.u32 %s520_s26, 4  ;;  %s34_s25 = int_to_ptr.vmem [resolvable:$true] %s33_s25  ;;  %s24_s27 = int_to_ptr.vmem [resolvable:$true] %s23_s27 }
   0x5   :  { %s401_s30 = scalar_lea.hbm %s642_s1, 128 }
   0x6   :  { %p402_p0 = scmp.ne.s32.totalorder %s642_s1, %s401_s30  ;;  %p405_p1 = scmp.lt.u32.totalorder %s401_s30, %s642_s1 }
   0x8   :  { %p407_p2 = pnand %p405_p1, %p402_p0 }
   0xa   :  { %410 = shalt.err (!%p407_p2)
}
   0xb   :  { %s411_s12 = scalar_lea.vmem %s34_s25, 128  ;;  %p416_p4 = scmp.lt.s32.totalorder %s34_s25, %s34_s25 }
   0xc   :  { %p412_p3 = scmp.ne.s32.totalorder %s34_s25, %s411_s12  ;;  %p417_p5 = scmp.lt.s32.totalorder %s411_s12, %s411_s12 }
   0xe   :  { %p418_p6 = por %p417_p5, %p416_p4 }
  0x10   :  { %p419_p7 = pnand %p418_p6, %p412_p3 }
  0x12   :  { %422 = shalt.err (!%p419_p7)
}
  0x13   :  { %36 = dma.hbm_to_vmem [thread:$0]  %s642_s1, 128, %s34_s25, [#allocation7]  }
  0x14   :  { %s423_s17 = scalar_lea.hbm %s641_s0, 128 }
  0x15   :  { %p424_p8 = scmp.ne.s32.totalorder %s641_s0, %s423_s17  ;;  %p427_p9 = scmp.lt.u32.totalorder %s423_s17, %s641_s0 }
  0x17   :  { %p429_p10 = pnand %p427_p9, %p424_p8 }
  0x19   :  { %432 = shalt.err (!%p429_p10)
}
  0x1a   :  { %s433_s22 = scalar_lea.vmem %s24_s27, 128  ;;  %p438_p12 = scmp.lt.s32.totalorder %s24_s27, %s24_s27 }
  0x1b   :  { %p434_p11 = scmp.ne.s32.totalorder %s24_s27, %s433_s22  ;;  %p439_p13 = scmp.lt.s32.totalorder %s433_s22, %s433_s22 }
  0x1d   :  { %p440_p0 = por %p439_p13, %p438_p12 }
  0x1f   :  { %p441_p1 = pnand %p440_p0, %p434_p11 }
  0x21   :  { %444 = shalt.err (!%p441_p1)
}
  0x22   :  { %26 = dma.hbm_to_vmem [thread:$0]  %s641_s0, 128, %s24_s27, [#allocation4]  }
  0x23   :  { %s521_s24 = smov [#allocation8]   ;;  %s445_s29 = scalar_lea.hbm %s643_s2, 512 }
  0x24   :  { %s42_s25 = sshll.u32 %s521_s24, 4  ;;  %p446_p2 = scmp.ne.s32.totalorder %s643_s2, %s445_s29  ;;  %s43_s25 = int_to_ptr.vmem [resolvable:$true] %s42_s25 }
  0x25   :  { %p449_p3 = scmp.lt.u32.totalorder %s445_s29, %s643_s2 }
  0x27   :  { %p451_p4 = pnand %p449_p3, %p446_p2 }
  0x29   :  { %454 = shalt.err (!%p451_p4)
}
  0x2a   :  { %s455_s11 = scalar_lea.vmem %s43_s25, 512  ;;  %p460_p6 = scmp.lt.s32.totalorder %s43_s25, %s43_s25 }
  0x2b   :  { %p456_p5 = scmp.ne.s32.totalorder %s43_s25, %s455_s11  ;;  %p461_p7 = scmp.lt.s32.totalorder %s455_s11, %s455_s11 }
  0x2d   :  { %p462_p8 = por %p461_p7, %p460_p6 }
  0x2f   :  { %p463_p9 = pnand %p462_p8, %p456_p5 }
  0x31   :  { %466 = shalt.err (!%p463_p9)
}
  0x32   :  { %s522_s0 = smov 128   ;;  %s523_s27 = smov 8  }
  0x33   :  { %48 = dma.hbm_to_vmem [thread:$0]  %s643_s2, 512, %s43_s25, [#allocation7], %s522_s0, %s522_s0, %s523_s27  }
  0x34   :  { %s524_s14 = smov [#allocation9]   ;;  %s467_s18 = scalar_lea.hbm %s644_s3, 512 }
  0x35   :  { %s54_s15 = sshll.u32 %s524_s14, 4  ;;  %p468_p10 = scmp.ne.s32.totalorder %s644_s3, %s467_s18  ;;  %s55_s15 = int_to_ptr.vmem [resolvable:$true] %s54_s15 }
  0x36   :  { %p471_p11 = scmp.lt.u32.totalorder %s467_s18, %s644_s3 }
  0x38   :  { %p473_p12 = pnand %p471_p11, %p468_p10 }
  0x3a   :  { %476 = shalt.err (!%p473_p12)
}
  0x3b   :  { %s477_s1 = scalar_lea.vmem %s55_s15, 512  ;;  %p482_p0 = scmp.lt.s32.totalorder %s55_s15, %s55_s15 }
  0x3c   :  { %p478_p13 = scmp.ne.s32.totalorder %s55_s15, %s477_s1  ;;  %p483_p1 = scmp.lt.s32.totalorder %s477_s1, %s477_s1 }
  0x3e   :  { %p484_p2 = por %p483_p1, %p482_p0 }
  0x40   :  { %p485_p3 = pnand %p484_p2, %p478_p13 }
  0x42   :  { %488 = shalt.err (!%p485_p3)
}
  0x43   :  { %60 = dma.hbm_to_vmem [thread:$0]  %s644_s3, 512, %s55_s15, [#allocation10], %s522_s0, %s522_s0, %s523_s27  }
  0x44   :  { %511 = dma.done.wait [#allocation4], 128  }
  0x45   :  { %512 = vsyncadd [#allocation4], 4294967168 }
  0x46   :  { %513 = dma.done.wait [#allocation7], 640  }
  0x47   :  { %514 = vsyncadd [#allocation7], 4294966656 }
  0x48   :  { %515 = dma.done.wait [#allocation10], 512  }
  0x49   :  { %516 = vsyncadd [#allocation10], 4294966784  ;;  %v525_v0 = vmov 0.0|0.0   ;;  %vm526_vm0 = vmmov 0   ;;  %v527_v1 = vmov 0.0   ;;  %v85_v2 = vld [vmem:[#allocation9] sm:$0xff]  ;;  %v247_v25 = vstv %s647_s6 }
  0x4a   :  { %379 = vmatprep.subr.bf16.mxu0 %v525_v0  ;;  %385 = vmatprep.subr.bf16.mxu1 %v525_v0  ;;  %v86_v3 = vld [vmem:[#allocation9 + $0x8] sm:$0xff]  ;;  %v81_v4 = vld [vmem:[#allocation8] sm:$0xff]  ;;  %v87_v7 = vld [vmem:[#allocation9 + $0x10] sm:$0xff]  ;;  %vm89_vm1 = vcmask 261120   ;;  %s528_s30 = smov [#allocation11]   ;;  %vm318_vm2 = vcmask 57344  }
  0x4b   :  { %360 = vmatprep.mubr.msk.f32.mxu0 %vm526_vm0, %v527_v1  ;;  %371 = vmatprep.mubr.msk.f32.mxu1 %vm526_vm0, %v527_v1  ;;  %v380_v5 = vpack.c.bf16 %v86_v3, %v85_v2  ;;  %v82_v6 = vld [vmem:[#allocation8 + $0x8] sm:$0xff]  ;;  %v88_v8 = vld [vmem:[#allocation9 + $0x18] sm:$0xff]  ;;  %v83_v10 = vld [vmem:[#allocation8 + $0x10] sm:$0xff]  ;;  %s326_s8 = sshll.u32 %s528_s30, 4  ;;  %s327_s8 = int_to_ptr.vmem [resolvable:$true] %s326_s8 }
  0x4c   :  { %v386_v9 = vpack.c.bf16 %v82_v6, %v81_v4  ;;  %v84_v11 = vld [vmem:[#allocation8 + $0x18] sm:$0xff]  ;;  %v383_v12 = vpack.c.bf16 %v88_v8, %v87_v7  ;;  %v79_v15 = vld [vmem:[#allocation3] sm:$0xff]  ;;  %s493_s9 = scalar_lea.vmem %s327_s8, 32  ;;  %p494_p5 = scmp.lt.s32.totalorder %s327_s8, %s327_s8 }
  0x4d   :  { %381 = vmatpush3.bf16.msra.mxu0 %v380_v5  ;;  %v389_v13 = vpack.c.bf16 %v84_v11, %v83_v10  ;;  %v80_v14 = vld [vmem:[#allocation6] sm:$0xff]  ;;  %v339_v18 = vld [vmem:[%s645_s4] ss:$0 sm:$0xff]  ;;  %s489_s4 = scalar_lea.vmem %s327_s8, 16 }
  0x4e   :  { %387 = vmatpush3.bf16.msra.mxu1 %v386_v9  ;;  %382 = vmatprep.subr.bf16.mxu0 %v525_v0  ;;  %v245_v24 = vld [vmem:[%s646_s5] sm:$0x1]  ;;  %p490_p4 = scmp.ne.s32.totalorder %s327_s8, %s489_s4  ;;  %p495_p6 = scmp.lt.s32.totalorder %s493_s9, %s489_s4 }
  0x4f   :  { %388 = vmatprep.subr.bf16.mxu1 %v525_v0 }
  0x50   :  { %p496_p7 = por %p495_p6, %p494_p5 }
  0x51   :  { %384 = vmatpush3.bf16.msra.mxu0 %v383_v12 }
  0x52   :  { %390 = vmatpush3.bf16.msra.mxu1 %v389_v13  ;;  %374 = vmatprep.subr.mxu0 %v527_v1  ;;  %p497_p8 = pnand %p496_p7, %p490_p4 }
  0x54   :  { %361 = vmatmul.mubr.msk.f32.vlgmr.msra.gmra.mrb[0].mxu0 %vm89_vm1, %v80_v14 }
  0x55   :  { %372 = vmatmul.mubr.msk.f32.vlgmr.msra.gmra.mrb[0].mxu1 %vm89_vm1, %v79_v15  ;;  %376 = vmatprep.mubr.msk.f32.mxu0 %vm526_vm0, %v527_v1 }
 0x127   :  { %v159_v16 = vpop.f32.mrb[0].mxu0 }
 0x128   :  { %v232_v17 = vpop.f32.mrb[0].mxu1  ;;  %v362_v19 = vpop.f32.mrb[1].mxu0 }
 0x129   :  { %v233_v20 = vadd.f32 %v232_v17, %v159_v16  ;;  %v373_v21 = vpop.f32.mrb[1].mxu1 }
 0x12b   :  { %v243_v22 = vadd.f32 %v339_v18, %v233_v20 }
 0x12d   :  { %v244_v23 = vmax.f32 %v243_v22, 0.0 }
 0x12f   :  { %375 = vmatpush3.xpose.msra.mxu0 %v244_v23 }
 0x132   :  { %377 = vmatmul.mubr.f32.vlgmr.msra.gmra.mrb[2].mxu0 %v245_v24 }
 0x205   :  { %v314_v26 = vpop.f32.mrb[2].mxu0 }
 0x206   :  { %v315_v27 = vadd.f32 %v314_v26, %v247_v25  ;;  %v378_v28 = vpop.f32.mrb[3].mxu0 }
 0x208   :  { %319 = vst.msk [vmem:[#allocation11] sm:$0x1] %vm318_vm2, %v315_v27 }
 0x209   :  { %500 = shalt.err (!%p497_p8)
}
 0x20a   :  { %s501_s6 = scalar_lea.hbm %s648_s7, 16 }
 0x20b   :  { %p502_p9 = scmp.ne.s32.totalorder %s648_s7, %s501_s6  ;;  %p505_p10 = scmp.lt.u32.totalorder %s501_s6, %s648_s7 }
 0x20d   :  { %p507_p11 = pnand %p505_p10, %p502_p9 }
 0x20f   :  { %510 = shalt.err (!%p507_p11)
}
 0x210   :  { %329 = dma.vmem_to_hbm [thread:$0]  %s327_s8, 16, %s648_s7, [#allocation5]  }
 0x211   :  { %517 = dma.done.wait [#allocation5], 16  }
 0x212   :  { %518 = vsyncadd [#allocation5], 4294967280 }
 0x213   :  { %333 = vsyncpa [#allocation4], 1 }
 0x214   :  { %334 = vsyncpa [#allocation7], 1 }
 0x215   :  { %335 = vsyncpa [#allocation10], 1 }
 0x216   :  { %336 = vsyncpa [#allocation5], 1 }

// kernel: tpu_custom_call.1
= control target key start
LH: loop header
LB: loop body
LE: loop exit
PB: predicated region body
PF: predicated region fallthrough
CT: control target
= control target key end

     0   :  { %13 = vsyncpa [#allocation4], 0  ;;  %s641_s0 = inlined_call_operand.hbm [shape: f32[8,32], index: 0, kind: input, shape index: {}]   ;;  %s642_s1 = inlined_call_operand.hbm [shape: f32[8,32], index: 1, kind: input, shape index: {}]   ;;  %s643_s2 = inlined_call_operand.hbm [shape: f32[32,128], index: 2, kind: input, shape index: {}]   ;;  %s644_s3 = inlined_call_operand.hbm [shape: f32[32,128], index: 3, kind: input, shape index: {}]   ;;  %s645_s4 = inlined_call_operand.vmem [shape: f32[1,128], index: 4, kind: input, shape index: {}]   ;;  %s646_s5 = inlined_call_operand.vmem [shape: f32[1,128], index: 5, kind: input, shape index: {}]   ;;  %s647_s6 = inlined_call_operand.<no memory space> [shape: f32[1,1], index: 6, kind: input, shape index: {}]   ;;  %s648_s7 = inlined_call_operand.hbm [shape: f32[1,8], index: 7, kind: output, shape index: {}]  }
   0x1   :  { %14 = vsyncpa [#allocation7], 0 }
   0x2   :  { %15 = vsyncpa [#allocation10], 0 }
   0x3   :  { %16 = vsyncpa [#allocation5], 0  ;;  %s519_s24 = smov [#allocation6]   ;;  %s520_s26 = smov [#allocation3]  }
   0x4   :  { %s33_s25 = sshll.u32 %s519_s24, 4  ;;  %s23_s27 = sshll.u32 %s520_s26, 4  ;;  %s34_s25 = int_to_ptr.vmem [resolvable:$true] %s33_s25  ;;  %s24_s27 = int_to_ptr.vmem [resolvable:$true] %s23_s27 }
   0x5   :  { %s401_s30 = scalar_lea.hbm %s642_s1, 128 }
   0x6   :  { %p402_p0 = scmp.ne.s32.totalorder %s642_s1, %s401_s30  ;;  %p405_p1 = scmp.lt.u32.totalorder %s401_s30, %s642_s1 }
   0x8   :  { %p407_p2 = pnand %p405_p1, %p402_p0 }
   0xa   :  { %410 = shalt.err (!%p407_p2)
}
   0xb   :  { %s411_s12 = scalar_lea.vmem %s34_s25, 128  ;;  %p416_p4 = scmp.lt.s32.totalorder %s34_s25, %s34_s25 }
   0xc   :  { %p412_p3 = scmp.ne.s32.totalorder %s34_s25, %s411_s12  ;;  %p417_p5 = scmp.lt.s32.totalorder %s411_s12, %s411_s12 }
   0xe   :  { %p418_p6 = por %p417_p5, %p416_p4 }
  0x10   :  { %p419_p7 = pnand %p418_p6, %p412_p3 }
  0x12   :  { %422 = shalt.err (!%p419_p7)
}
  0x13   :  { %36 = dma.hbm_to_vmem [thread:$0]  %s642_s1, 128, %s34_s25, [#allocation7]  }
  0x14   :  { %s423_s17 = scalar_lea.hbm %s641_s0, 128 }
  0x15   :  { %p424_p8 = scmp.ne.s32.totalorder %s641_s0, %s423_s17  ;;  %p427_p9 = scmp.lt.u32.totalorder %s423_s17, %s641_s0 }
  0x17   :  { %p429_p10 = pnand %p427_p9, %p424_p8 }
  0x19   :  { %432 = shalt.err (!%p429_p10)
}
  0x1a   :  { %s433_s22 = scalar_lea.vmem %s24_s27, 128  ;;  %p438_p12 = scmp.lt.s32.totalorder %s24_s27, %s24_s27 }
  0x1b   :  { %p434_p11 = scmp.ne.s32.totalorder %s24_s27, %s433_s22  ;;  %p439_p13 = scmp.lt.s32.totalorder %s433_s22, %s433_s22 }
  0x1d   :  { %p440_p0 = por %p439_p13, %p438_p12 }
  0x1f   :  { %p441_p1 = pnand %p440_p0, %p434_p11 }
  0x21   :  { %444 = shalt.err (!%p441_p1)
}
  0x22   :  { %26 = dma.hbm_to_vmem [thread:$0]  %s641_s0, 128, %s24_s27, [#allocation4]  }
  0x23   :  { %s521_s24 = smov [#allocation8]   ;;  %s445_s29 = scalar_lea.hbm %s643_s2, 512 }
  0x24   :  { %s42_s25 = sshll.u32 %s521_s24, 4  ;;  %p446_p2 = scmp.ne.s32.totalorder %s643_s2, %s445_s29  ;;  %s43_s25 = int_to_ptr.vmem [resolvable:$true] %s42_s25 }
  0x25   :  { %p449_p3 = scmp.lt.u32.totalorder %s445_s29, %s643_s2 }
  0x27   :  { %p451_p4 = pnand %p449_p3, %p446_p2 }
  0x29   :  { %454 = shalt.err (!%p451_p4)
}
  0x2a   :  { %s455_s11 = scalar_lea.vmem %s43_s25, 512  ;;  %p460_p6 = scmp.lt.s32.totalorder %s43_s25, %s43_s25 }
  0x2b   :  { %p456_p5 = scmp.ne.s32.totalorder %s43_s25, %s455_s11  ;;  %p461_p7 = scmp.lt.s32.totalorder %s455_s11, %s455_s11 }
  0x2d   :  { %p462_p8 = por %p461_p7, %p460_p6 }
  0x2f   :  { %p463_p9 = pnand %p462_p8, %p456_p5 }
  0x31   :  { %466 = shalt.err (!%p463_p9)
}
  0x32   :  { %s522_s0 = smov 128   ;;  %s523_s27 = smov 8  }
  0x33   :  { %48 = dma.hbm_to_vmem [thread:$0]  %s643_s2, 512, %s43_s25, [#allocation7], %s522_s0, %s522_s0, %s523_s27  }
  0x34   :  { %s524_s14 = smov [#allocation9]   ;;  %s467_s18 = scalar_lea.hbm %s644_s3, 512 }
  0x35   :  { %s54_s15 = sshll.u32 %s524_s14, 4  ;;  %p468_p10 = scmp.ne.s32.totalorder %s644_s3, %s467_s18  ;;  %s55_s15 = int_to_ptr.vmem [resolvable:$true] %s54_s15 }
  0x36   :  { %p471_p11 = scmp.lt.u32.totalorder %s467_s18, %s644_s3 }
  0x38   :  { %p473_p12 = pnand %p471_p11, %p468_p10 }
  0x3a   :  { %476 = shalt.err (!%p473_p12)
}
  0x3b   :  { %s477_s1 = scalar_lea.vmem %s55_s15, 512  ;;  %p482_p0 = scmp.lt.s32.totalorder %s55_s15, %s55_s15 }
  0x3c   :  { %p478_p13 = scmp.ne.s32.totalorder %s55_s15, %s477_s1  ;;  %p483_p1 = scmp.lt.s32.totalorder %s477_s1, %s477_s1 }
  0x3e   :  { %p484_p2 = por %p483_p1, %p482_p0 }
  0x40   :  { %p485_p3 = pnand %p484_p2, %p478_p13 }
  0x42   :  { %488 = shalt.err (!%p485_p3)
}
  0x43   :  { %60 = dma.hbm_to_vmem [thread:$0]  %s644_s3, 512, %s55_s15, [#allocation10], %s522_s0, %s522_s0, %s523_s27  }
  0x44   :  { %511 = dma.done.wait [#allocation4], 128  }
  0x45   :  { %512 = vsyncadd [#allocation4], 4294967168 }
  0x46   :  { %513 = dma.done.wait [#allocation7], 640  }
  0x47   :  { %514 = vsyncadd [#allocation7], 4294966656 }
  0x48   :  { %515 = dma.done.wait [#allocation10], 512  }
  0x49   :  { %516 = vsyncadd [#allocation10], 4294966784  ;;  %v525_v0 = vmov 0.0|0.0   ;;  %vm526_vm0 = vmmov 0   ;;  %v527_v1 = vmov 0.0   ;;  %v85_v2 = vld [vmem:[#allocation9] sm:$0xff]  ;;  %v247_v25 = vstv %s647_s6 }
  0x4a   :  { %379 = vmatprep.subr.bf16.mxu0 %v525_v0  ;;  %385 = vmatprep.subr.bf16.mxu1 %v525_v0  ;;  %v86_v3 = vld [vmem:[#allocation9 + $0x8] sm:$0xff]  ;;  %v81_v4 = vld [vmem:[#allocation8] sm:$0xff]  ;;  %v87_v7 = vld [vmem:[#allocation9 + $0x10] sm:$0xff]  ;;  %vm89_vm1 = vcmask 261120   ;;  %s528_s30 = smov [#allocation11]   ;;  %vm318_vm2 = vcmask 57344  }
  0x4b   :  { %360 = vmatprep.mubr.msk.f32.mxu0 %vm526_vm0, %v527_v1  ;;  %371 = vmatprep.mubr.msk.f32.mxu1 %vm526_vm0, %v527_v1  ;;  %v380_v5 = vpack.c.bf16 %v86_v3, %v85_v2  ;;  %v82_v6 = vld [vmem:[#allocation8 + $0x8] sm:$0xff]  ;;  %v88_v8 = vld [vmem:[#allocation9 + $0x18] sm:$0xff]  ;;  %v83_v10 = vld [vmem:[#allocation8 + $0x10] sm:$0xff]  ;;  %s326_s8 = sshll.u32 %s528_s30, 4  ;;  %s327_s8 = int_to_ptr.vmem [resolvable:$true] %s326_s8 }
  0x4c   :  { %v386_v9 = vpack.c.bf16 %v82_v6, %v81_v4  ;;  %v84_v11 = vld [vmem:[#allocation8 + $0x18] sm:$0xff]  ;;  %v383_v12 = vpack.c.bf16 %v88_v8, %v87_v7  ;;  %v79_v15 = vld [vmem:[#allocation3] sm:$0xff]  ;;  %s493_s9 = scalar_lea.vmem %s327_s8, 32  ;;  %p494_p5 = scmp.lt.s32.totalorder %s327_s8, %s327_s8 }
  0x4d   :  { %381 = vmatpush3.bf16.msra.mxu0 %v380_v5  ;;  %v389_v13 = vpack.c.bf16 %v84_v11, %v83_v10  ;;  %v80_v14 = vld [vmem:[#allocation6] sm:$0xff]  ;;  %v339_v18 = vld [vmem:[%s645_s4] ss:$0 sm:$0xff]  ;;  %s489_s4 = scalar_lea.vmem %s327_s8, 16 }
  0x4e   :  { %387 = vmatpush3.bf16.msra.mxu1 %v386_v9  ;;  %382 = vmatprep.subr.bf16.mxu0 %v525_v0  ;;  %v245_v24 = vld [vmem:[%s646_s5] sm:$0x1]  ;;  %p490_p4 = scmp.ne.s32.totalorder %s327_s8, %s489_s4  ;;  %p495_p6 = scmp.lt.s32.totalorder %s493_s9, %s489_s4 }
  0x4f   :  { %388 = vmatprep.subr.bf16.mxu1 %v525_v0 }
  0x50   :  { %p496_p7 = por %p495_p6, %p494_p5 }
  0x51   :  { %384 = vmatpush3.bf16.msra.mxu0 %v383_v12 }
  0x52   :  { %390 = vmatpush3.bf16.msra.mxu1 %v389_v13  ;;  %374 = vmatprep.subr.mxu0 %v527_v1  ;;  %p497_p8 = pnand %p496_p7, %p490_p4 }
  0x54   :  { %361 = vmatmul.mubr.msk.f32.vlgmr.msra.gmra.mrb[0].mxu0 %vm89_vm1, %v80_v14 }
  0x55   :  { %372 = vmatmul.mubr.msk.f32.vlgmr.msra.gmra.mrb[0].mxu1 %vm89_vm1, %v79_v15  ;;  %376 = vmatprep.mubr.msk.f32.mxu0 %vm526_vm0, %v527_v1 }
 0x127   :  { %v159_v16 = vpop.f32.mrb[0].mxu0 }
 0x128   :  { %v232_v17 = vpop.f32.mrb[0].mxu1  ;;  %v362_v19 = vpop.f32.mrb[1].mxu0 }
 0x129   :  { %v233_v20 = vadd.f32 %v232_v17, %v159_v16  ;;  %v373_v21 = vpop.f32.mrb[1].mxu1 }
 0x12b   :  { %v243_v22 = vadd.f32 %v339_v18, %v233_v20 }
 0x12d   :  { %v244_v23 = vmax.f32 %v243_v22, 0.0 }
 0x12f   :  { %375 = vmatpush3.xpose.msra.mxu0 %v244_v23 }
 0x132   :  { %377 = vmatmul.mubr.f32.vlgmr.msra.gmra.mrb[2].mxu0 %v245_v24 }
 0x205   :  { %v314_v26 = vpop.f32.mrb[2].mxu0 }
 0x206   :  { %v315_v27 = vadd.f32 %v314_v26, %v247_v25  ;;  %v378_v28 = vpop.f32.mrb[3].mxu0 }
 0x208   :  { %319 = vst.msk [vmem:[#allocation11] sm:$0x1] %vm318_vm2, %v315_v27 }
 0x209   :  { %500 = shalt.err (!%p497_p8)
}
 0x20a   :  { %s501_s6 = scalar_lea.hbm %s648_s7, 16 }
 0x20b   :  { %p502_p9 = scmp.ne.s32.totalorder %s648_s7, %s501_s6  ;;  %p505_p10 = scmp.lt.u32.totalorder %s501_s6, %s648_s7 }
 0x20d   :  { %p507_p11 = pnand %p505_p10, %p502_p9 }
 0x20f   :  { %510 = shalt.err (!%p507_p11)
}
 0x210   :  { %329 = dma.vmem_to_hbm [thread:$0]  %s327_s8, 16, %s648_s7, [#allocation5]  }
 0x211   :  { %517 = dma.done.wait [#allocation5], 16  }
 0x212   :  { %518 = vsyncadd [#allocation5], 4294967280 }
 0x213   :  { %333 = vsyncpa [#allocation4], 1 }
 0x214   :  { %334 = vsyncpa [#allocation7], 1 }
 0x215   :  { %335 = vsyncpa [#allocation10], 1 }
 0x216   :  { %336 = vsyncpa [#allocation5], 1 }

</bundles_post_ra>
